<compile_context>
chip_gen: v5e
topology: v5e:2x2
jax: 0.10.0
libtpu: 0.0.40
codegen_flags: <defaults>
</compile_context>

<pallas_src>
import functools

import jax
import jax.numpy as jnp
from jax.experimental import pallas as pl
from jax.experimental.pallas import tpu as pltpu

INPUT_DIM = 33
HIDDEN_DIM = 200
OUTPUT_DIM = 100
HIDDEN_PAD = 256   # 200 -> 256 (lane-dense, exact MXU tile)
OUTPUT_PAD = 128   # 100 -> 128 (lane-dense output stores)
NEG_SLOPE = 0.01   # nn.LeakyReLU() default


def _round_up(n, m):
    return ((n + m - 1) // m) * m


def _leaky_relu(x):
    # maximum-form: 2 VPU ops (mul+max) instead of 3 (cmp+mul+select);
    # identical result for 0 < slope < 1.
    return jnp.maximum(x, NEG_SLOPE * x)


def _p2s_kernel(x_ref, w1_ref, b1_ref, w2_ref, b2_ref, w3_ref, b3_ref, o_ref):
    # x tile: (TILE_B, 33) f32 -> bf16 for the MXU; f32 MXU accumulation.
    x = x_ref[...].astype(jnp.bfloat16)

    # fc1: f32 accumulate, then bf16 bias-add + LeakyReLU (halves VALU work on
    # v6e/v7x, and the result is already bf16 for the next matmul).
    h = jnp.dot(x, w1_ref[...], preferred_element_type=jnp.float32)
    h = _leaky_relu(h.astype(jnp.bfloat16) + b1_ref[...])

    # fc2
    h = jnp.dot(h, w2_ref[...], preferred_element_type=jnp.float32)
    h = _leaky_relu(h.astype(jnp.bfloat16) + b2_ref[...])

    # fc3 (no activation): bias-add in f32 for best accuracy, then cast to the
    # (default bf16) output dtype.
    out = jnp.dot(h, w3_ref[...], preferred_element_type=jnp.float32) + b3_ref[...]
    o_ref[...] = out.astype(o_ref.dtype)


def prepare_params(w1, b1, w2, b2, w3, b3):
    """Pad feature dims (zeros are numerically inert) and cast to the kernel
    dtypes ONCE, outside the per-call forward.  Returns the padded param tuple
    expected by p2s_forward_padded()."""
    H, Hp, O, Op = HIDDEN_DIM, HIDDEN_PAD, OUTPUT_DIM, OUTPUT_PAD
    w1p = jnp.pad(w1, ((0, 0), (0, Hp - H))).astype(jnp.bfloat16)
    b1p = jnp.pad(b1, ((0, 0), (0, Hp - H))).astype(jnp.bfloat16)
    w2p = jnp.pad(w2, ((0, Hp - H), (0, Hp - H))).astype(jnp.bfloat16)
    b2p = jnp.pad(b2, ((0, 0), (0, Hp - H))).astype(jnp.bfloat16)
    w3p = jnp.pad(w3, ((0, Hp - H), (0, Op - O))).astype(jnp.bfloat16)
    b3p = jnp.pad(b3, ((0, 0), (0, Op - O))).astype(jnp.float32)
    return tuple(jax.device_put(p) for p in (w1p, b1p, w2p, b2p, w3p, b3p))


@functools.partial(jax.jit, static_argnames=("tile_b_max", "out_dtype"))
def p2s_forward_padded(x, padded_params, *, tile_b_max=2048, out_dtype=jnp.bfloat16):
    """x: (B, 33) f32; padded_params from prepare_params().

    Returns the PADDED output (b_pad, 128) in `out_dtype` (default bf16); the
    valid result is out[:B, :100].  Slice lazily at the consumer so the slice
    copy stays off the hot path."""
    w1p, b1p, w2p, b2p, w3p, b3p = padded_params
    B, in_dim = x.shape
    assert in_dim == INPUT_DIM

    Hp, Op = HIDDEN_PAD, OUTPUT_PAD

    # Batch tiling: tile_b multiple of 16 (bf16 sublane pack), capped at tile_b_max.
    tile_b = min(tile_b_max, _round_up(B, 16))
    b_pad = _round_up(B, tile_b)
    xp = jnp.pad(x, ((0, b_pad - B), (0, 0))) if b_pad != B else x
    grid = (b_pad // tile_b,)

    out_bytes = jnp.dtype(out_dtype).itemsize
    flops = 2 * b_pad * (INPUT_DIM * Hp + Hp * Hp + Hp * Op)
    bytes_accessed = (b_pad * INPUT_DIM * 4 + b_pad * Op * out_bytes
                      + (INPUT_DIM * Hp + Hp * Hp + Hp * Op) * 2
                      + (Hp + Hp) * 2 + Op * 4)

    out = pl.pallas_call(
        _p2s_kernel,
        out_shape=jax.ShapeDtypeStruct((b_pad, Op), out_dtype),
        grid_spec=pltpu.PrefetchScalarGridSpec(
            num_scalar_prefetch=0,
            grid=grid,
            in_specs=[
                pl.BlockSpec((tile_b, INPUT_DIM), lambda i: (i, 0)),  # x tile
                pl.BlockSpec((INPUT_DIM, Hp), lambda i: (0, 0)),      # w1 (resident)
                pl.BlockSpec((1, Hp), lambda i: (0, 0)),              # b1
                pl.BlockSpec((Hp, Hp), lambda i: (0, 0)),             # w2
                pl.BlockSpec((1, Hp), lambda i: (0, 0)),              # b2
                pl.BlockSpec((Hp, Op), lambda i: (0, 0)),             # w3
                pl.BlockSpec((1, Op), lambda i: (0, 0)),              # b3
            ],
            out_specs=pl.BlockSpec((tile_b, Op), lambda i: (i, 0)),
        ),
        compiler_params=pltpu.CompilerParams(
            dimension_semantics=("parallel",),        # shards batch across v7x TCs
            vmem_limit_bytes=32 * 1024 * 1024,        # headroom for tile_b up to ~4096
        ),
        cost_estimate=pl.CostEstimate(
            flops=flops, transcendentals=0, bytes_accessed=bytes_accessed),
    )(xp, w1p, b1p, w2p, b2p, w3p, b3p)

    return out


def p2s_forward(x, padded_params, *, tile_b_max=2048, out_dtype=jnp.bfloat16):
    """Convenience wrapper returning the torch-shaped (B, 100) result.
    Prefer p2s_forward_padded + lazy slicing in performance-critical pipelines."""
    out = p2s_forward_padded(x, padded_params, tile_b_max=tile_b_max,
                             out_dtype=out_dtype)
    return out[: x.shape[0], :OUTPUT_DIM]


def init_params(key):
    """torch.nn.Linear-style init (U[-1/sqrt(fan_in), 1/sqrt(fan_in)]).
    Weights stored as (in_features, out_features)."""
    ks = jax.random.split(key, 6)

    def lin(kw, kb, fan_in, fan_out):
        bound = 1.0 / jnp.sqrt(jnp.float32(fan_in))
        w = jax.random.uniform(kw, (fan_in, fan_out), jnp.float32, -bound, bound)
        b = jax.random.uniform(kb, (1, fan_out), jnp.float32, -bound, bound)
        return w, b

    w1, b1 = lin(ks[0], ks[1], INPUT_DIM, HIDDEN_DIM)
    w2, b2 = lin(ks[2], ks[3], HIDDEN_DIM, HIDDEN_DIM)
    w3, b3 = lin(ks[4], ks[5], HIDDEN_DIM, OUTPUT_DIM)
    return w1, b1, w2, b2, w3, b3


def _reference_bf16(x, w1, b1, w2, b2, w3, b3):
    """Reference mirroring the kernel's bf16-matmul / f32-accumulate /
    bf16-elementwise semantics (output left in f32)."""
    def dot(a, w):
        return jnp.dot(a.astype(jnp.bfloat16), w.astype(jnp.bfloat16),
                       preferred_element_type=jnp.float32)
    h = _leaky_relu(dot(x, w1).astype(jnp.bfloat16) + b1.astype(jnp.bfloat16))
    h = _leaky_relu(dot(h, w2).astype(jnp.bfloat16) + b2.astype(jnp.bfloat16))
    return dot(h, w3) + b3


def _reference_f32(x, w1, b1, w2, b2, w3, b3):
    h = _leaky_relu(x @ w1 + b1)
    h = _leaky_relu(h @ w2 + b2)
    return h @ w3 + b3


if __name__ == "__main__":
    key = jax.random.PRNGKey(0)
    k_x, k_x2, k_p = jax.random.split(key, 3)
    params = init_params(k_p)
    padded_params = prepare_params(*params)   # pad + cast once, not per call

    # Small single-tile case (uses the fast padded path directly).
    B = 8
    x = jax.random.normal(k_x, (B, INPUT_DIM), jnp.float32)
    out_padded = jax.block_until_ready(p2s_forward_padded(x, padded_params))
    assert out_padded.shape[1] == OUTPUT_PAD
    out = out_padded[:B, :OUTPUT_DIM].astype(jnp.float32)
    assert out.shape == (B, OUTPUT_DIM)
    ref = _reference_bf16(x, *params)
    assert jnp.allclose(out, ref, atol=2e-2, rtol=2e-2), "mismatch vs bf16 reference"
    assert jnp.allclose(out, _reference_f32(x, *params), atol=1e-1, rtol=1e-1), \
        "mismatch vs f32 reference"

    # Multi-tile case with a ragged final tile (exercises grid + batch padding).
    B2 = 300
    x2 = jax.random.normal(k_x2, (B2, INPUT_DIM), jnp.float32)
    out2 = jax.block_until_ready(p2s_forward(x2, padded_params, tile_b_max=128))
    assert out2.shape == (B2, OUTPUT_DIM)
    ref2 = _reference_bf16(x2, *params)
    assert jnp.allclose(out2.astype(jnp.float32), ref2, atol=2e-2, rtol=2e-2), \
        "mismatch vs bf16 reference (gridded)"

    print("KERNEL_OK")
</pallas_src>

<mosaic_0001>
module attributes {stable_mosaic.version = 11 : i64} {
  func.func @_p2s_kernel(%arg0: i32, %arg1: memref<16x33xf32, #tpu.memory_space<vmem>>, %arg2: memref<33x256xbf16, #tpu.memory_space<vmem>>, %arg3: memref<1x256xbf16, #tpu.memory_space<vmem>>, %arg4: memref<256x256xbf16, #tpu.memory_space<vmem>>, %arg5: memref<1x256xbf16, #tpu.memory_space<vmem>>, %arg6: memref<256x128xbf16, #tpu.memory_space<vmem>>, %arg7: memref<1x128xf32, #tpu.memory_space<vmem>>, %arg8: memref<16x128xbf16, #tpu.memory_space<vmem>>) attributes {dimension_semantics = [#tpu.dimension_semantics<parallel>], iteration_bounds = array<i64: 1>, scalar_prefetch = 0 : i64, scratch_operands = 0 : i64, tpu.core_type = #tpu.core_type<tc>, window_params = [{transform_indices = @transform_0, window_bounds = array<i64: 16, 33>}, {pipeline_mode = #tpu.pipeline_mode<synchronous>, transform_indices = @transform_1, window_bounds = array<i64: 33, 256>}, {pipeline_mode = #tpu.pipeline_mode<synchronous>, transform_indices = @transform_2, window_bounds = array<i64: 1, 256>}, {pipeline_mode = #tpu.pipeline_mode<synchronous>, transform_indices = @transform_3, window_bounds = array<i64: 256, 256>}, {pipeline_mode = #tpu.pipeline_mode<synchronous>, transform_indices = @transform_4, window_bounds = array<i64: 1, 256>}, {pipeline_mode = #tpu.pipeline_mode<synchronous>, transform_indices = @transform_5, window_bounds = array<i64: 256, 128>}, {pipeline_mode = #tpu.pipeline_mode<synchronous>, transform_indices = @transform_6, window_bounds = array<i64: 1, 128>}, {transform_indices = @transform_7, window_bounds = array<i64: 16, 128>}]} {
    %c0 = arith.constant 0 : index
    %c0_0 = arith.constant 0 : index
    %0 = vector.load %arg1[%c0, %c0_0] : memref<16x33xf32, #tpu.memory_space<vmem>>, vector<16x33xf32>
    %1 = arith.truncf %0 : vector<16x33xf32> to vector<16x33xbf16>
    %c0_1 = arith.constant 0 : index
    %c0_2 = arith.constant 0 : index
    %2 = vector.load %arg2[%c0_1, %c0_2] : memref<33x256xbf16, #tpu.memory_space<vmem>>, vector<33x256xbf16>
    %cst = arith.constant dense<0.000000e+00> : vector<16x256xf32>
    %3 = tpu.matmul %1, %2, %cst {dimension_numbers = #tpu.dot_dimension_numbers<[1], [0], [0], [1], [0, 0, 1, 1], [], []>} : vector<16x33xbf16>, vector<33x256xbf16>, vector<16x256xf32> -> vector<16x256xf32>
    %4 = arith.truncf %3 : vector<16x256xf32> to vector<16x256xbf16>
    %c0_3 = arith.constant 0 : index
    %c0_4 = arith.constant 0 : index
    %5 = vector.load %arg3[%c0_3, %c0_4] : memref<1x256xbf16, #tpu.memory_space<vmem>>, vector<1x256xbf16>
    %6 = vector.broadcast %5 : vector<1x256xbf16> to vector<16x256xbf16>
    %7 = arith.addf %4, %6 : vector<16x256xbf16>
    %cst_5 = arith.constant 1.000980e-02 : bf16
    %8 = vector.broadcast %cst_5 : bf16 to vector<16x256xbf16>
    %9 = arith.mulf %8, %7 : vector<16x256xbf16>
    %10 = arith.maximumf %7, %9 : vector<16x256xbf16>
    %c0_6 = arith.constant 0 : index
    %c0_7 = arith.constant 0 : index
    %11 = vector.load %arg4[%c0_6, %c0_7] : memref<256x256xbf16, #tpu.memory_space<vmem>>, vector<256x256xbf16>
    %cst_8 = arith.constant dense<0.000000e+00> : vector<16x256xf32>
    %12 = tpu.matmul %10, %11, %cst_8 {dimension_numbers = #tpu.dot_dimension_numbers<[1], [0], [0], [1], [0, 0, 1, 1], [], []>} : vector<16x256xbf16>, vector<256x256xbf16>, vector<16x256xf32> -> vector<16x256xf32>
    %13 = arith.truncf %12 : vector<16x256xf32> to vector<16x256xbf16>
    %c0_9 = arith.constant 0 : index
    %c0_10 = arith.constant 0 : index
    %14 = vector.load %arg5[%c0_9, %c0_10] : memref<1x256xbf16, #tpu.memory_space<vmem>>, vector<1x256xbf16>
    %15 = vector.broadcast %14 : vector<1x256xbf16> to vector<16x256xbf16>
    %16 = arith.addf %13, %15 : vector<16x256xbf16>
    %cst_11 = arith.constant 1.000980e-02 : bf16
    %17 = vector.broadcast %cst_11 : bf16 to vector<16x256xbf16>
    %18 = arith.mulf %17, %16 : vector<16x256xbf16>
    %19 = arith.maximumf %16, %18 : vector<16x256xbf16>
    %c0_12 = arith.constant 0 : index
    %c0_13 = arith.constant 0 : index
    %20 = vector.load %arg6[%c0_12, %c0_13] : memref<256x128xbf16, #tpu.memory_space<vmem>>, vector<256x128xbf16>
    %cst_14 = arith.constant dense<0.000000e+00> : vector<16x128xf32>
    %21 = tpu.matmul %19, %20, %cst_14 {dimension_numbers = #tpu.dot_dimension_numbers<[1], [0], [0], [1], [0, 0, 1, 1], [], []>} : vector<16x256xbf16>, vector<256x128xbf16>, vector<16x128xf32> -> vector<16x128xf32>
    %c0_15 = arith.constant 0 : index
    %c0_16 = arith.constant 0 : index
    %22 = vector.load %arg7[%c0_15, %c0_16] : memref<1x128xf32, #tpu.memory_space<vmem>>, vector<1x128xf32>
    %23 = vector.broadcast %22 : vector<1x128xf32> to vector<16x128xf32>
    %24 = arith.addf %21, %23 : vector<16x128xf32>
    %25 = arith.truncf %24 : vector<16x128xf32> to vector<16x128xbf16>
    %c0_17 = arith.constant 0 : index
    %c0_18 = arith.constant 0 : index
    %26 = vector.load %arg8[%c0_17, %c0_18] : memref<16x128xbf16, #tpu.memory_space<vmem>>, vector<16x128xbf16>
    tpu.vector_store %arg8[%c0_17, %c0_18], %25 {strides = array<i32>} : memref<16x128xbf16, #tpu.memory_space<vmem>>, vector<16x128xbf16>,
    return
  }
  func.func @transform_0(%arg0: i32) -> (i32, i32) {
    %c0_i32 = arith.constant 0 : i32
    %c0_i32_0 = arith.constant 0 : i32
    return %arg0, %c0_i32 : i32, i32
  }
  func.func @transform_1(%arg0: i32) -> (i32, i32) {
    %c0_i32 = arith.constant 0 : i32
    %c0_i32_0 = arith.constant 0 : i32
    %c0_i32_1 = arith.constant 0 : i32
    return %c0_i32, %c0_i32_0 : i32, i32
  }
  func.func @transform_2(%arg0: i32) -> (i32, i32) {
    %c0_i32 = arith.constant 0 : i32
    %c0_i32_0 = arith.constant 0 : i32
    %c0_i32_1 = arith.constant 0 : i32
    return %c0_i32, %c0_i32_0 : i32, i32
  }
  func.func @transform_3(%arg0: i32) -> (i32, i32) {
    %c0_i32 = arith.constant 0 : i32
    %c0_i32_0 = arith.constant 0 : i32
    %c0_i32_1 = arith.constant 0 : i32
    return %c0_i32, %c0_i32_0 : i32, i32
  }
  func.func @transform_4(%arg0: i32) -> (i32, i32) {
    %c0_i32 = arith.constant 0 : i32
    %c0_i32_0 = arith.constant 0 : i32
    %c0_i32_1 = arith.constant 0 : i32
    return %c0_i32, %c0_i32_0 : i32, i32
  }
  func.func @transform_5(%arg0: i32) -> (i32, i32) {
    %c0_i32 = arith.constant 0 : i32
    %c0_i32_0 = arith.constant 0 : i32
    %c0_i32_1 = arith.constant 0 : i32
    return %c0_i32, %c0_i32_0 : i32, i32
  }
  func.func @transform_6(%arg0: i32) -> (i32, i32) {
    %c0_i32 = arith.constant 0 : i32
    %c0_i32_0 = arith.constant 0 : i32
    %c0_i32_1 = arith.constant 0 : i32
    return %c0_i32, %c0_i32_0 : i32, i32
  }
  func.func @transform_7(%arg0: i32) -> (i32, i32) {
    %c0_i32 = arith.constant 0 : i32
    %c0_i32_0 = arith.constant 0 : i32
    return %arg0, %c0_i32 : i32, i32
  }
}

</mosaic_0001>

<bundles_post_ra>
// kernel: p2s_forward_padded.1
= control target key start
LH: loop header
LB: loop body
LE: loop exit
PB: predicated region body
PF: predicated region fallthrough
CT: control target
= control target key end

     0   :  { %12 = vsyncpa [#allocation3], 0  ;;  %s1140_s0 = inlined_call_operand.vmem [shape: f32[16,33], index: 0, kind: input, shape index: {}]   ;;  %s1141_s1 = inlined_call_operand.hbm [shape: bf16[33,256], index: 1, kind: input, shape index: {}]   ;;  %s1142_s2 = inlined_call_operand.vmem [shape: bf16[1,256], index: 2, kind: input, shape index: {}]   ;;  %s1143_s3 = inlined_call_operand.hbm [shape: bf16[256,256], index: 3, kind: input, shape index: {}]   ;;  %s1144_s4 = inlined_call_operand.vmem [shape: bf16[1,256], index: 4, kind: input, shape index: {}]   ;;  %s1145_s5 = inlined_call_operand.hbm [shape: bf16[256,128], index: 5, kind: input, shape index: {}]   ;;  %s1146_s6 = inlined_call_operand.vmem [shape: f32[1,128], index: 6, kind: input, shape index: {}]   ;;  %s1147_s7 = inlined_call_operand.hbm [shape: bf16[16,128], index: 7, kind: output, shape index: {}]  }
   0x1   :  { %13 = vsyncpa [#allocation6], 0 }
   0x2   :  { %14 = vsyncpa [#allocation4], 0  ;;  %s36_s26 = sshll.u32 %s1143_s3, 4  ;;  %s1050_s27 = smov [#allocation5]   ;;  %s37_s26 = int_to_ptr.hbm [resolvable:$true] %s36_s26 }
   0x3   :  { %s38_s28 = sshll.u32 %s1050_s27, 4  ;;  %s21_s8 = sshll.u32 %s1141_s1, 4  ;;  %s39_s28 = int_to_ptr.vmem [resolvable:$true] %s38_s28  ;;  %s22_s8 = int_to_ptr.hbm [resolvable:$true] %s21_s8 }
   0x4   :  { %s1051_s9 = smov 128   ;;  %s1052_s10 = smov 8  }
   0x5   :  { %44 = dma.hbm_to_vmem [thread:$0]  %s37_s26, 4096, %s39_s28, [#allocation6], %s1051_s9, %s1051_s9, %s1052_s10  }
   0x6   :  { %s1053_s11 = smov [#allocation2]   ;;  %s51_s15 = sshll.u32 %s1145_s5, 4  ;;  %s52_s15 = int_to_ptr.hbm [resolvable:$true] %s51_s15 }
   0x7   :  { %s23_s12 = sshll.u32 %s1053_s11, 4  ;;  %s1054_s3 = smov [#allocation7]   ;;  %s24_s12 = int_to_ptr.vmem [resolvable:$true] %s23_s12 }
   0x8   :  { %29 = dma.hbm_to_vmem [thread:$0]  %s22_s8, 640, %s24_s12, [#allocation3], %s1051_s9, %s1051_s9, %s1052_s10  }
   0x9   :  { %s53_s16 = sshll.u32 %s1054_s3, 4  ;;  %s1055_s17 = smov 64   ;;  %s54_s16 = int_to_ptr.vmem [resolvable:$true] %s53_s16 }
   0xa   :  { %s1056_s18 = smov 4  }
   0xb   :  { %59 = dma.hbm_to_vmem [thread:$0]  %s52_s15, 2048, %s54_s16, [#allocation6], %s1055_s17, %s1055_s17, %s1056_s18  }
   0xc   :  { %1044 = dma.done.wait [#allocation3], 640  }
   0xd   :  { %1045 = vsyncadd [#allocation3], 4294966656 }
   0xe   :  { %1046 = dma.done.wait [#allocation6], 6144  }
   0xf   :  { %1047 = vsyncadd [#allocation6], 4294961152  ;;  %vm112_vm0 = vcmask 1040384   ;;  %v82_v0 = vld [vmem:[#allocation2 + $0x20] sm:$0x11]  ;;  %v1057_v3 = vmov 0  }
  0x10   :  { %v96_v1 = vunpack.c.l.b16 %v82_v0  ;;  %v97_v2 = vunpack.c.h.b16 %v82_v0  ;;  %v114_v4 = vsel %vm112_vm0, 65535, %v1057_v3  ;;  %v681_v5 = vld [vmem:[#allocation2 + $0x10] sm:$0xf]  ;;  %v884_v6 = vld [vmem:[#allocation2 + $0x14] sm:$0xf0]  ;;  %v76_v38 = vld [vmem:[%s1140_s0 + $0x8] sm:$0xff] }
  0x11   :  { %v883_v9 = vld [vmem:[#allocation2 + $0x14] sm:$0xf]  ;;  %v683_v10 = vld [vmem:[#allocation2 + $0x18] sm:$0xf0]  ;;  %v747_v11 = vld [vmem:[#allocation5 + $0x70] sm:$0xf]  ;;  %v682_v23 = vor.u32 %v884_v6, %v681_v5 }
  0x12   :  { %v102_v7 = vpack.c.b16 %v96_v1, %v96_v1  ;;  %v103_v8 = vpack.c.b16 %v97_v2, %v97_v2  ;;  %v900_v12 = vld [vmem:[#allocation5 + $0x74] sm:$0xf0]  ;;  %v811_v13 = vld [vmem:[#allocation5 + $0xf0] sm:$0xf]  ;;  %v882_v20 = vld [vmem:[#allocation2 + $0x4] sm:$0xf0]  ;;  %v686_v24 = vor.u32 %v883_v9, %v683_v10 }
  0x13   :  { %v916_v14 = vld [vmem:[#allocation5 + $0xf4] sm:$0xf0]  ;;  %v748_v17 = vor.u32 %v900_v12, %v747_v11  ;;  %v739_v21 = vld [vmem:[#allocation5 + $0x60] sm:$0xf]  ;;  %v898_v22 = vld [vmem:[#allocation5 + $0x64] sm:$0xf0] }
  0x14   :  { %v116_v15 = vand.u32 %v114_v4, %v102_v7  ;;  %v119_v16 = vand.u32 %v114_v4, %v103_v8  ;;  %v812_v18 = vor.u32 %v916_v14, %v811_v13  ;;  %v673_v19 = vld [vmem:[#allocation2] sm:$0xf]  ;;  %v881_v25 = vld [vmem:[#allocation2 + $0x4] sm:$0xf]  ;;  %v803_v26 = vld [vmem:[#allocation5 + $0xe0] sm:$0xf]  ;;  %v740_v31 = vor.u32 %v898_v22, %v739_v21 }
  0x15   :  { %v914_v27 = vld [vmem:[#allocation5 + $0xe4] sm:$0xf0]  ;;  %v675_v28 = vld [vmem:[#allocation2 + $0x8] sm:$0xf0]  ;;  %386 = vmatpush.bf16.msra.mxu2 %v748_v17  ;;  %v899_v29 = vld [vmem:[#allocation5 + $0x74] sm:$0xf]  ;;  %v674_v35 = vor.u32 %v882_v20, %v673_v19 }
  0x16   :  { %126 = vmatpush.bf16.msra.mxu0 %v116_v15  ;;  %140 = vmatpush.bf16.msra.mxu1 %v119_v16  ;;  %v749_v30 = vld [vmem:[#allocation5 + $0x78] sm:$0xf0]  ;;  %v804_v32 = vor.u32 %v914_v27, %v803_v26  ;;  %v915_v33 = vld [vmem:[#allocation5 + $0xf4] sm:$0xf]  ;;  %v678_v36 = vor.u32 %v881_v25, %v675_v28  ;;  %v897_v41 = vld [vmem:[#allocation5 + $0x64] sm:$0xf] }
  0x17   :  { %400 = vmatpush.bf16.msra.mxu3 %v812_v18  ;;  %v813_v34 = vld [vmem:[#allocation5 + $0xf8] sm:$0xf0]  ;;  %v75_v37 = vld [vmem:[%s1140_s0] sm:$0xff]  ;;  %v752_v39 = vor.u32 %v899_v29, %v749_v30  ;;  %v741_v42 = vld [vmem:[#allocation5 + $0x68] sm:$0xf0]  ;;  %vm108_vm1 = vcmask 269312  }
  0x18   :  { %v816_v40 = vor.u32 %v915_v33, %v813_v34  ;;  %v913_v43 = vld [vmem:[#allocation5 + $0xe4] sm:$0xf]  ;;  %v805_v44 = vld [vmem:[#allocation5 + $0xe8] sm:$0xf0]  ;;  %v77_v45 = vpack.c.bf16 %v76_v38, %v75_v37  ;;  %v744_v46 = vor.u32 %v897_v41, %v741_v42  ;;  %v151_v48 = vld [vmem:[%s1142_s2] sm:$0x3] }
  0x19   :  { %387 = vmatpush.bf16.msra.mxu2 %v740_v31  ;;  %v808_v47 = vor.u32 %v913_v43, %v805_v44  ;;  %153 = vst [vmem:[#allocation1] ss:$9 sm:$0xff] %v151_v48  ;;  %v731_v49 = vld [vmem:[#allocation5 + $0x50] sm:$0xf]  ;;  %v896_v50 = vld [vmem:[#allocation5 + $0x54] sm:$0xf0] }
  0x1a   :  { %127 = vmatpush.bf16.msra.mxu0 %v682_v23  ;;  %141 = vmatpush.bf16.msra.mxu1 %v686_v24  ;;  %v795_v51 = vld [vmem:[#allocation5 + $0xd0] sm:$0xf]  ;;  %v732_v52 = vor.u32 %v896_v50, %v731_v49  ;;  %v912_v53 = vld [vmem:[#allocation5 + $0xd4] sm:$0xf0]  ;;  %v895_v54 = vld [vmem:[#allocation5 + $0x54] sm:$0xf] }
  0x1b   :  { %401 = vmatpush.bf16.msra.mxu3 %v804_v32  ;;  %v733_v55 = vld [vmem:[#allocation5 + $0x58] sm:$0xf0]  ;;  %v796_v56 = vor.u32 %v912_v53, %v795_v51  ;;  %v911_v58 = vld [vmem:[#allocation5 + $0xd4] sm:$0xf]  ;;  %v723_v61 = vld [vmem:[#allocation5 + $0x40] sm:$0xf] }
  0x1c   :  { %v736_v57 = vor.u32 %v895_v54, %v733_v55  ;;  %v797_v59 = vld [vmem:[#allocation5 + $0xd8] sm:$0xf0]  ;;  %v894_v62 = vld [vmem:[#allocation5 + $0x44] sm:$0xf0]  ;;  %v787_v63 = vld [vmem:[#allocation5 + $0xc0] sm:$0xf] }
  0x1d   :  { %388 = vmatpush.bf16.msra.mxu2 %v732_v52  ;;  %v800_v60 = vor.u32 %v911_v58, %v797_v59  ;;  %v724_v0 = vor.u32 %v894_v62, %v723_v61  ;;  %v910_v1 = vld [vmem:[#allocation5 + $0xc4] sm:$0xf0]  ;;  %v893_v2 = vld [vmem:[#allocation5 + $0x44] sm:$0xf]  ;;  %v725_v3 = vld [vmem:[#allocation5 + $0x48] sm:$0xf0] }
  0x1e   :  { %128 = vmatpush.bf16.msra.mxu0 %v674_v35  ;;  %142 = vmatpush.bf16.msra.mxu1 %v678_v36  ;;  %v788_v4 = vor.u32 %v910_v1, %v787_v63  ;;  %v728_v5 = vor.u32 %v893_v2, %v725_v3  ;;  %v909_v6 = vld [vmem:[#allocation5 + $0xc4] sm:$0xf]  ;;  %v789_v7 = vld [vmem:[#allocation5 + $0xc8] sm:$0xf0]  ;;  %v444_v11 = vld [vmem:[%s1144_s4] sm:$0x3] }
  0x1f   :  { %402 = vmatpush.bf16.msra.mxu3 %v796_v56  ;;  %v792_v10 = vor.u32 %v909_v6, %v789_v7  ;;  %v715_v12 = vld [vmem:[#allocation5 + $0x30] sm:$0xf]  ;;  %v892_v13 = vld [vmem:[#allocation5 + $0x34] sm:$0xf0]  ;;  %v891_v18 = vld [vmem:[#allocation5 + $0x34] sm:$0xf] }
  0x20   :  { %v1120_v8 = vld [vmem:[#allocation1] sm:$0xff]  ;;  %v1122_v9 = vld [vmem:[#allocation1 + $0x9] sm:$0xff]  ;;  %v716_v14 = vor.u32 %v892_v13, %v715_v12  ;;  %v890_v25 = vld [vmem:[#allocation5 + $0x24] sm:$0xf0]  ;;  %s1058_s24 = smov [#allocation8]   ;;  %s657_s28 = sshll.u32 %s1147_s7, 4  ;;  %s658_s28 = int_to_ptr.hbm [resolvable:$true] %s657_s28 }
  0x21   :  { %687 = vmatmul.msk.bf16.vlgmr.msra.gmra.mxu0 %vm108_vm1, %v77_v45  ;;  %688 = vmatmul.msk.bf16.vlgmr.msra.gmra.mxu1 %vm108_vm1, %v77_v45  ;;  %446 = vst [vmem:[#allocation1] ss:$9 sm:$0xff] %v444_v11  ;;  %v779_v15 = vld [vmem:[#allocation5 + $0xb0] sm:$0xf]  ;;  %v908_v16 = vld [vmem:[#allocation5 + $0xb4] sm:$0xf0]  ;;  %v159_v61 = vpack.i.b16 %v1122_v9, %v1122_v9 }
  0x22   :  { %414 = vmatpush.bf16.msrb.mxu0 %v752_v39  ;;  %428 = vmatpush.bf16.msrb.mxu1 %v816_v40  ;;  %v780_v17 = vor.u32 %v908_v16, %v779_v15  ;;  %v717_v19 = vld [vmem:[#allocation5 + $0x38] sm:$0xf0]  ;;  %v907_v20 = vld [vmem:[#allocation5 + $0xb4] sm:$0xf]  ;;  %v707_v24 = vld [vmem:[#allocation5 + $0x20] sm:$0xf] }
  0x23   :  { %389 = vmatpush.bf16.msra.mxu2 %v724_v0  ;;  %403 = vmatpush.bf16.msra.mxu3 %v788_v4  ;;  %v720_v21 = vor.u32 %v891_v18, %v717_v19  ;;  %v781_v22 = vld [vmem:[#allocation5 + $0xb8] sm:$0xf0]  ;;  %v771_v26 = vld [vmem:[#allocation5 + $0xa0] sm:$0xf]  ;;  %v708_v27 = vor.u32 %v890_v25, %v707_v24  ;;  %v906_v28 = vld [vmem:[#allocation5 + $0xa4] sm:$0xf0] }
  0x24   :  { %v784_v23 = vor.u32 %v907_v20, %v781_v22  ;;  %v889_v29 = vld [vmem:[#allocation5 + $0x24] sm:$0xf]  ;;  %v709_v30 = vld [vmem:[#allocation5 + $0x28] sm:$0xf0]  ;;  %v772_v31 = vor.u32 %v906_v28, %v771_v26  ;;  %v699_v36 = vld [vmem:[#allocation5 + $0x10] sm:$0xf] }
  0x25   :  { %v712_v32 = vor.u32 %v889_v29, %v709_v30  ;;  %v905_v33 = vld [vmem:[#allocation5 + $0xa4] sm:$0xf]  ;;  %v773_v34 = vld [vmem:[#allocation5 + $0xa8] sm:$0xf0]  ;;  %v888_v37 = vld [vmem:[#allocation5 + $0x14] sm:$0xf0] }
  0x26   :  { %415 = vmatpush.bf16.msrb.mxu0 %v744_v46  ;;  %429 = vmatpush.bf16.msrb.mxu1 %v808_v47  ;;  %v776_v35 = vor.u32 %v905_v33, %v773_v34  ;;  %v763_v38 = vld [vmem:[#allocation5 + $0x90] sm:$0xf]  ;;  %v700_v39 = vor.u32 %v888_v37, %v699_v36  ;;  %v904_v40 = vld [vmem:[#allocation5 + $0x94] sm:$0xf0]  ;;  %v887_v41 = vld [vmem:[#allocation5 + $0x14] sm:$0xf] }
  0x27   :  { %390 = vmatpush.bf16.msra.mxu2 %v716_v14  ;;  %404 = vmatpush.bf16.msra.mxu3 %v780_v17  ;;  %v701_v42 = vld [vmem:[#allocation5 + $0x18] sm:$0xf0]  ;;  %v764_v43 = vor.u32 %v904_v40, %v763_v38  ;;  %v903_v45 = vld [vmem:[#allocation5 + $0x94] sm:$0xf]  ;;  %v691_v47 = vld [vmem:[#allocation5] sm:$0xf] }
  0x28   :  { %v704_v44 = vor.u32 %v887_v41, %v701_v42  ;;  %v765_v46 = vld [vmem:[#allocation5 + $0x98] sm:$0xf0]  ;;  %v886_v49 = vld [vmem:[#allocation5 + $0x4] sm:$0xf0]  ;;  %v755_v50 = vld [vmem:[#allocation5 + $0x80] sm:$0xf] }
  0x29   :  { %v768_v48 = vor.u32 %v903_v45, %v765_v46  ;;  %v902_v51 = vld [vmem:[#allocation5 + $0x84] sm:$0xf0]  ;;  %v692_v52 = vor.u32 %v886_v49, %v691_v47  ;;  %v885_v54 = vld [vmem:[#allocation5 + $0x4] sm:$0xf]  ;;  %v693_v55 = vld [vmem:[#allocation5 + $0x8] sm:$0xf0] }
  0x2a   :  { %416 = vmatpush.bf16.msrb.mxu0 %v736_v57  ;;  %430 = vmatpush.bf16.msrb.mxu1 %v800_v60  ;;  %v756_v53 = vor.u32 %v902_v51, %v755_v50  ;;  %v901_v56 = vld [vmem:[#allocation5 + $0x84] sm:$0xf]  ;;  %v696_v57 = vor.u32 %v885_v54, %v693_v55  ;;  %v757_v58 = vld [vmem:[#allocation5 + $0x88] sm:$0xf0]  ;;  %v156_v60 = vpack.i.b16 %v1120_v8, %v1120_v8  ;;  %v161_v63 = vperm.slane %v159_v61, 0  ;;  %v932_v33 = vld [vmem:[#allocation7 + $0x78] sm:$0xff] }
  0x2b   :  { %391 = vmatpush.bf16.msra.mxu2 %v708_v27  ;;  %405 = vmatpush.bf16.msra.mxu3 %v772_v31  ;;  %v760_v59 = vor.u32 %v901_v56, %v757_v58  ;;  %v923_v34 = vld [vmem:[#allocation7 + $0x30] sm:$0xff]  ;;  %v922_v36 = vld [vmem:[#allocation7 + $0x28] sm:$0xff]  ;;  %v921_v38 = vld [vmem:[#allocation7 + $0x20] sm:$0xff]  ;;  %s655_s25 = sshll.u32 %s1058_s24, 4  ;;  %s656_s25 = int_to_ptr.vmem [resolvable:$true] %s655_s25 }
  0x2c   :  { %v158_v62 = vperm.slane %v156_v60, 0  ;;  %v167_v4 = vunpack.c.l.bf16 %v161_v63  ;;  %v930_v37 = vld [vmem:[#allocation7 + $0x68] sm:$0xff]  ;;  %v920_v40 = vld [vmem:[#allocation7 + $0x18] sm:$0xff]  ;;  %v919_v42 = vld [vmem:[#allocation7 + $0x10] sm:$0xff] }
  0x2d   :  { %v928_v41 = vld [vmem:[#allocation7 + $0x58] sm:$0xff]  ;;  %v926_v45 = vld [vmem:[#allocation7 + $0x48] sm:$0xff]  ;;  %v917_v46 = vld [vmem:[#allocation7] sm:$0xff] }
  0x2e   :  { %417 = vmatpush.bf16.msrb.mxu0 %v728_v5  ;;  %431 = vmatpush.bf16.msrb.mxu1 %v792_v10  ;;  %v166_v3 = vunpack.c.l.bf16 %v158_v62  ;;  %v925_v47 = vld [vmem:[#allocation7 + $0x40] sm:$0xff] }
  0x2f   :  { %392 = vmatpush.bf16.msra.mxu2 %v700_v39  ;;  %406 = vmatpush.bf16.msra.mxu3 %v764_v43  ;;  %v929_v39 = vld [vmem:[#allocation7 + $0x60] sm:$0xff]  ;;  %v927_v43 = vld [vmem:[#allocation7 + $0x50] sm:$0xff] }
  0x30   :  { %v448_v49 = vld [vmem:[#allocation1 + $0x9] sm:$0xff] }
  0x31   :  { %v452_v51 = vpack.i.b16 %v448_v49, %v448_v49 }
  0x32   :  { %418 = vmatpush.bf16.msrb.mxu0 %v720_v21  ;;  %432 = vmatpush.bf16.msrb.mxu1 %v784_v23 }
  0x33   :  { %393 = vmatpush.bf16.msra.mxu2 %v692_v52  ;;  %407 = vmatpush.bf16.msra.mxu3 %v756_v53  ;;  %v454_v55 = vperm.slane %v452_v51, 0 }
  0x35   :  { %v460_v62 = vunpack.c.l.bf16 %v454_v55 }
  0x36   :  { %419 = vmatpush.bf16.msrb.mxu0 %v712_v32  ;;  %433 = vmatpush.bf16.msrb.mxu1 %v776_v35  ;;  %v924_v32 = vld [vmem:[#allocation7 + $0x38] sm:$0xff]  ;;  %v931_v35 = vld [vmem:[#allocation7 + $0x70] sm:$0xff] }
  0x37   :  { %619 = vmatpush.bf16.msrb.mxu2 %v924_v32  ;;  %633 = vmatpush.bf16.msrb.mxu3 %v932_v33  ;;  %v947_v32 = vld [vmem:[%s1146_s6] ss:$0 sm:$0xff] }
  0x3a   :  { %420 = vmatpush.bf16.msrb.mxu0 %v704_v44  ;;  %434 = vmatpush.bf16.msrb.mxu1 %v768_v48  ;;  %v918_v44 = vld [vmem:[#allocation7 + $0x8] sm:$0xff]  ;;  %v447_v48 = vld [vmem:[#allocation1] sm:$0xff] }
  0x3b   :  { %620 = vmatpush.bf16.msrb.mxu2 %v923_v34  ;;  %634 = vmatpush.bf16.msrb.mxu3 %v931_v35  ;;  %v449_v50 = vpack.i.b16 %v447_v48, %v447_v48 }
  0x3d   :  { %v451_v54 = vperm.slane %v449_v50, 0 }
  0x3e   :  { %421 = vmatpush.bf16.msrb.mxu0 %v696_v57  ;;  %435 = vmatpush.bf16.msrb.mxu1 %v760_v59 }
  0x3f   :  { %621 = vmatpush.bf16.msrb.mxu2 %v922_v36  ;;  %635 = vmatpush.bf16.msrb.mxu3 %v930_v37  ;;  %v459_v61 = vunpack.c.l.bf16 %v451_v54 }
  0x43   :  { %622 = vmatpush.bf16.msrb.mxu2 %v921_v38  ;;  %636 = vmatpush.bf16.msrb.mxu3 %v929_v39 }
  0x47   :  { %623 = vmatpush.bf16.msrb.mxu2 %v920_v40  ;;  %637 = vmatpush.bf16.msrb.mxu3 %v928_v41 }
  0x4b   :  { %624 = vmatpush.bf16.msrb.mxu2 %v919_v42  ;;  %638 = vmatpush.bf16.msrb.mxu3 %v927_v43 }
  0x4f   :  { %625 = vmatpush.bf16.msrb.mxu2 %v918_v44  ;;  %639 = vmatpush.bf16.msrb.mxu3 %v926_v45 }
  0x53   :  { %626 = vmatpush.bf16.msrb.mxu2 %v917_v46  ;;  %640 = vmatpush.bf16.msrb.mxu3 %v925_v47 }
  0x9e   :  { %v130_v0 = vpop.f32.mrf.mxu0  ;;  %v144_v1 = vpop.f32.mrf.mxu1 }
  0x9f   :  { %v149_v2 = vpack.c.bf16 %v144_v1, %v130_v0 }
  0xa1   :  { %v162_v5 = vunpack.c.l.bf16 %v149_v2  ;;  %v163_v6 = vunpack.c.h.bf16 %v149_v2 }
  0xa3   :  { %v168_v7 = vadd.f32 %v166_v3, %v162_v5  ;;  %v169_v10 = vadd.f32 %v167_v4, %v163_v6 }
  0xa5   :  { %v172_v13 = vpack.c.bf16 %v169_v10, %v168_v7 }
  0xa6   :  { %v132_v11 = vpop.f32.mrf.mxu0  ;;  %v146_v12 = vpop.f32.mrf.mxu1 }
  0xa7   :  { %v150_v14 = vpack.c.bf16 %v146_v12, %v132_v11  ;;  %v174_v17 = vunpack.c.l.bf16 %v172_v13  ;;  %v175_v18 = vunpack.c.h.bf16 %v172_v13 }
  0xa9   :  { %v164_v8 = vunpack.c.l.bf16 %v150_v14  ;;  %v165_v15 = vunpack.c.h.bf16 %v150_v14  ;;  %v178_v21 = vmul.f32 0.010009766, %v174_v17  ;;  %v179_v23 = vmul.f32 0.010009766, %v175_v18 }
  0xab   :  { %v170_v16 = vadd.f32 %v166_v3, %v164_v8  ;;  %v171_v9 = vadd.f32 %v167_v4, %v165_v15  ;;  %v188_v26 = vmax.f32 %v174_v17, %v178_v21  ;;  %v189_v28 = vmax.f32 %v175_v18, %v179_v23 }
  0xad   :  { %v173_v19 = vpack.c.bf16 %v171_v9, %v170_v16 }
  0xaf   :  { %v176_v20 = vunpack.c.l.bf16 %v173_v19  ;;  %v177_v22 = vunpack.c.h.bf16 %v173_v19 }
  0xb1   :  { %v180_v24 = vmul.f32 0.010009766, %v176_v20  ;;  %v181_v25 = vmul.f32 0.010009766, %v177_v22 }
  0xb3   :  { %v190_v27 = vmax.f32 %v176_v20, %v180_v24  ;;  %v191_v29 = vmax.f32 %v177_v22, %v181_v25 }
  0xb5   :  { %v192_v30 = vpack.c.bf16 %v190_v27, %v188_v26  ;;  %v193_v31 = vpack.c.bf16 %v191_v29, %v189_v28 }
  0xb7   :  { %394 = vmatmul.bf16.vlgmr.msra.gmra.mxu2 %v192_v30  ;;  %408 = vmatmul.bf16.vlgmr.msra.gmra.mxu3 %v193_v31 }
  0xb8   :  { %422 = vmatmul.bf16.vlgmr.msrb.gmra.mxu0 %v192_v30  ;;  %436 = vmatmul.bf16.vlgmr.msrb.gmra.mxu1 %v193_v31 }
 0x135   :  { %v423_v52 = vpop.f32.mrf.mxu0  ;;  %v437_v53 = vpop.f32.mrf.mxu1 }
 0x136   :  { %v438_v58 = vadd.f32 %v437_v53, %v423_v52 }
 0x13a   :  { %v395_v56 = vpop.f32.mrf.mxu2  ;;  %v409_v57 = vpop.f32.mrf.mxu3 }
 0x13b   :  { %v410_v59 = vadd.f32 %v409_v57, %v395_v56 }
 0x13d   :  { %v442_v60 = vpack.c.bf16 %v438_v58, %v410_v59  ;;  %v425_v1 = vpop.f32.mrf.mxu0  ;;  %v439_v2 = vpop.f32.mrf.mxu1 }
 0x13e   :  { %v440_v7 = vadd.f32 %v439_v2, %v425_v1 }
 0x13f   :  { %v455_v63 = vunpack.c.l.bf16 %v442_v60  ;;  %v456_v0 = vunpack.c.h.bf16 %v442_v60 }
 0x141   :  { %v461_v3 = vadd.f32 %v459_v61, %v455_v63  ;;  %v462_v4 = vadd.f32 %v460_v62, %v456_v0 }
 0x142   :  { %v397_v5 = vpop.f32.mrf.mxu2  ;;  %v411_v6 = vpop.f32.mrf.mxu3 }
 0x143   :  { %v412_v10 = vadd.f32 %v411_v6, %v397_v5  ;;  %v465_v11 = vpack.c.bf16 %v462_v4, %v461_v3 }
 0x145   :  { %v443_v12 = vpack.c.bf16 %v440_v7, %v412_v10  ;;  %v467_v16 = vunpack.c.l.bf16 %v465_v11  ;;  %v468_v9 = vunpack.c.h.bf16 %v465_v11 }
 0x147   :  { %v457_v13 = vunpack.c.l.bf16 %v443_v12  ;;  %v458_v14 = vunpack.c.h.bf16 %v443_v12  ;;  %v471_v19 = vmul.f32 0.010009766, %v467_v16  ;;  %v472_v21 = vmul.f32 0.010009766, %v468_v9 }
 0x149   :  { %v463_v8 = vadd.f32 %v459_v61, %v457_v13  ;;  %v464_v15 = vadd.f32 %v460_v62, %v458_v14  ;;  %v481_v24 = vmax.f32 %v467_v16, %v471_v19  ;;  %v482_v26 = vmax.f32 %v468_v9, %v472_v21 }
 0x14b   :  { %v466_v17 = vpack.c.bf16 %v464_v15, %v463_v8 }
 0x14d   :  { %v469_v18 = vunpack.c.l.bf16 %v466_v17  ;;  %v470_v20 = vunpack.c.h.bf16 %v466_v17 }
 0x14f   :  { %v473_v22 = vmul.f32 0.010009766, %v469_v18  ;;  %v474_v23 = vmul.f32 0.010009766, %v470_v20 }
 0x151   :  { %v483_v25 = vmax.f32 %v469_v18, %v473_v22  ;;  %v484_v27 = vmax.f32 %v470_v20, %v474_v23 }
 0x153   :  { %v485_v28 = vpack.c.bf16 %v483_v25, %v481_v24  ;;  %v486_v29 = vpack.c.bf16 %v484_v27, %v482_v26 }
 0x155   :  { %627 = vmatmul.bf16.vlgmr.msrb.gmra.mxu2 %v485_v28  ;;  %641 = vmatmul.bf16.vlgmr.msrb.gmra.mxu3 %v486_v29 }
 0x1d8   :  { %v628_v30 = vpop.f32.mrf.mxu2  ;;  %v642_v31 = vpop.f32.mrf.mxu3 }
 0x1d9   :  { %v629_v33 = vadd.f32 %v947_v32, %v628_v30 }
 0x1db   :  { %v643_v37 = vadd.f32 %v642_v31, %v629_v33 }
 0x1e0   :  { %v630_v34 = vpop.f32.mrf.mxu2  ;;  %v644_v36 = vpop.f32.mrf.mxu3 }
 0x1e1   :  { %v631_v35 = vadd.f32 %v947_v32, %v630_v34 }
 0x1e3   :  { %v645_v38 = vadd.f32 %v644_v36, %v631_v35 }
 0x1e5   :  { %v936_v39 = vpack.c.bf16 %v645_v38, %v643_v37 }
 0x1e7   :  { %937 = vst [vmem:[#allocation8] sm:$0xff] %v936_v39  }
 0x1e8   :  { %663 = dma.vmem_to_hbm [thread:$0]  %s656_s25, 128, %s658_s28, [#allocation4], %s1055_s17, %s1055_s17, %s1056_s18  }
 0x1e9   :  { %1048 = dma.done.wait [#allocation4], 128  }
 0x1ea   :  { %1049 = vsyncadd [#allocation4], 4294967168 }
 0x1eb   :  { %668 = vsyncpa [#allocation3], 1 }
 0x1ec   :  { %669 = vsyncpa [#allocation6], 1 }
 0x1ed   :  { %670 = vsyncpa [#allocation4], 1 }

</bundles_post_ra>
